<compile_context>
chip_gen: v6e
topology: v6e:2x2x1
jax: 0.10.0
libtpu: 0.0.40
codegen_flags: <defaults>
</compile_context>

<pallas_src>
import functools

import jax
import jax.numpy as jnp
from jax.experimental import pallas as pl
from jax.experimental.pallas import tpu as pltpu


def _fused_cnn_kernel(x_ref, w_ref, cb_ref, mask_ref, fw_ref, fb_ref, out_ref,
                      slab_ref, *, B, Cin, Wp, L, Lpad):
    """Fused 3x3 conv (in-kernel im2col) + bias + ReLU + global-avg-pool + FC.

    x_ref:    [B, Cin, (H+2)*(W+2)] f32   padded images, channel-major, spatial flat
    w_ref:    [Cconv, 9*Cin]        bf16  conv weight, row o, col t*Cin+c (t=kh*3+kw)
    cb_ref:   [Cconv, 1]            f32   conv bias column
    mask_ref: [1, Lpad]             f32   pooling mask: 1/(H*W) on valid cols, else 0
    fw_ref:   [NC, Cconv]           f32   fc weight (PyTorch [out, in] layout)
    fb_ref:   [NC, 1]               f32   fc bias column
    out_ref:  [NC, B]               f32   logits (one column per image)
    slab_ref: [9*Cin, B*Lpad]       bf16  im2col scratch (VMEM)
    """
    # Zero the scratch so the pad columns (>= L within each image segment) are
    # finite; the pooling mask zeroes them (and the wrap columns r % Wp >= W).
    slab_ref[...] = jnp.zeros_like(slab_ref)

    # In-kernel im2col: 9 static tap windows per image copied into lane-aligned
    # scratch columns.  Tap (kh, kw) starts at flat offset kh*Wp + kw; column
    # r = h*Wp + w of an image segment holds output pixel (h, w).
    for b in range(B):
        for t in range(9):
            kh, kw = divmod(t, 3)
            start = kh * Wp + kw                                    # static offset
            tap = x_ref[b, :, pl.ds(start, L)]                      # [Cin, L]
            slab_ref[pl.ds(t * Cin, Cin), pl.ds(b * Lpad, L)] = (
                tap.astype(slab_ref.dtype))

    # Single MXU matmul: K = 9*Cin over every tap/channel, N = B*Lpad over every
    # pixel of every image.  bf16 operands, f32 accumulation.
    conv = jnp.dot(w_ref[...], slab_ref[...],
                   preferred_element_type=jnp.float32)              # [Cconv, B*Lpad]
    h = jnp.maximum(conv + cb_ref[...], 0.0)                        # bias + ReLU

    # Global average pool: VPU multiply by the lane-dense mask (1/(H*W) folded
    # in), then an XLU lane reduce per image.  Segment starts are multiples of
    # Lpad (itself a multiple of 128), so these slices are lane-aligned.
    mask = mask_ref[...]                                            # hoisted load
    cols = []
    for b in range(B):
        seg = h[:, b * Lpad:(b + 1) * Lpad] * mask                  # [Cconv, Lpad]
        cols.append(jnp.sum(seg, axis=-1, keepdims=True))           # [Cconv, 1]
    pooled = jnp.concatenate(cols, axis=-1)                         # [Cconv, B]

    # Classifier head (tiny; kept f32 for precision).
    # TODO(synk): at realistic head sizes (e.g. 1000 classes) cast this to bf16 too.
    logits = jnp.dot(fw_ref[...], pooled,
                     preferred_element_type=jnp.float32) + fb_ref[...]   # [NC, B]
    out_ref[...] = logits.astype(out_ref.dtype)


def my_model_forward(x_nchw, params):
    """x_nchw: [B, Cin, H, W] float32 -> logits [B, num_classes]."""
    cw, cb, fw, fb = params                     # cw: [Cconv, Cin, 3, 3] (PyTorch)
    B, Cin, H, W = x_nchw.shape
    Cconv = cw.shape[0]
    NC = fw.shape[0]

    Wp = W + 2
    padlen = (H + 2) * Wp
    L = H * Wp - 2          # tap-window length: covers all output pixels, in bounds
    Lpad = ((L + 127) // 128) * 128      # lane-aligned per-image segment length

    # Spatial halo pad in the wrapper; channel-major so channels sit on sublanes
    # and the flattened spatial axis lands on lanes inside the kernel.
    # TODO(synk): at backbone resolutions, absorb the halo via in-kernel DMA instead.
    x_pad = jnp.pad(x_nchw, ((0, 0), (0, 0), (1, 1), (1, 1)))       # [B,Cin,H+2,W+2]
    x_flat = x_pad.reshape(B, Cin, padlen)                           # layout-preserving

    # Conv weight flattened tap-major to match the slab row order; bf16 MXU operand.
    w_flat = jnp.transpose(cw, (0, 2, 3, 1)).reshape(Cconv, 9 * Cin)
    w_flat = w_flat.astype(jnp.bfloat16)
    cb_col = cb.reshape(Cconv, 1).astype(jnp.float32)
    fb_col = fb.reshape(NC, 1).astype(jnp.float32)

    # Pooling mask: column r of an image segment is a valid output pixel iff
    # r < L and (r % Wp) < W; 1/(H*W) is folded in so the reduce is a plain sum.
    r = jnp.arange(Lpad)
    mask = jnp.where((r < L) & ((r % Wp) < W), 1.0 / (H * W), 0.0)
    mask = mask.astype(jnp.float32).reshape(1, Lpad)

    kernel = functools.partial(_fused_cnn_kernel, B=B, Cin=Cin, Wp=Wp, L=L,
                               Lpad=Lpad)

    # Whole batch in one kernel invocation (no grid): at these sizes the total
    # work is far below one grid step's fixed overhead, so everything is fused.
    # TODO(synk): at realistic resolutions/batch, add a grid that tiles the
    # spatial axis (and batch), sized against 64 MiB VMEM on v7x.
    out = pl.pallas_call(
        kernel,
        out_shape=jax.ShapeDtypeStruct((NC, B), jnp.float32),
        scratch_shapes=[pltpu.VMEM((9 * Cin, B * Lpad), jnp.bfloat16)],
    )(x_flat, w_flat, cb_col, mask, fw.astype(jnp.float32), fb_col)

    return out.T                                                     # [B, NC]


def reference_forward(x_nchw, params):
    """Pure-JAX reference for correctness checking."""
    cw, cb, fw, fb = params
    y = jax.lax.conv_general_dilated(
        x_nchw, cw, window_strides=(1, 1), padding="SAME",
        dimension_numbers=("NCHW", "OIHW", "NCHW"))
    y = jnp.maximum(y + cb.reshape(1, -1, 1, 1), 0.0)
    pooled = jnp.mean(y, axis=(2, 3))                # [B, Cconv]
    return pooled @ fw.T + fb


def init_params(key, cin, cconv, num_classes):
    # PyTorch-native layouts: conv weight [Cout, Cin, kh, kw], linear [out, in].
    k1, k2, k3, k4 = jax.random.split(key, 4)
    cw = jax.random.normal(k1, (cconv, cin, 3, 3), jnp.float32) * 0.1
    cb = jax.random.normal(k2, (cconv,), jnp.float32) * 0.01
    fw = jax.random.normal(k3, (num_classes, cconv), jnp.float32) * 0.1
    fb = jax.random.normal(k4, (num_classes,), jnp.float32) * 0.01
    return cw, cb, fw, fb


if __name__ == "__main__":
    B, Cin, H, W = 2, 4, 16, 16
    Cconv, num_classes = 8, 10

    key = jax.random.PRNGKey(0)
    kx, kp = jax.random.split(key)
    x = jax.random.normal(kx, (B, Cin, H, W), jnp.float32)      # NCHW like PyTorch
    params = init_params(kp, Cin, Cconv, num_classes)

    logits = jax.jit(my_model_forward)(x, params)
    jax.block_until_ready(logits)

    assert logits.shape == (B, num_classes)
    assert logits.dtype == jnp.float32

    ref = reference_forward(x, params)
    max_err = float(jnp.max(jnp.abs(logits - ref)))
    # Tolerance sized for bf16 conv-matmul operands with f32 accumulation.
    assert max_err < 3e-2, f"mismatch vs reference: max abs err {max_err}"

    print("KERNEL_OK")
</pallas_src>

<mosaic_0001>
module attributes {stable_mosaic.version = 11 : i64} {
  func.func @_fused_cnn_kernel(%arg0: memref<2x4x324xf32, #tpu.memory_space<vmem>>, %arg1: memref<8x36xbf16, #tpu.memory_space<vmem>>, %arg2: memref<8x1xf32, #tpu.memory_space<vmem>>, %arg3: memref<1x384xf32, #tpu.memory_space<vmem>>, %arg4: memref<10x8xf32, #tpu.memory_space<vmem>>, %arg5: memref<10x1xf32, #tpu.memory_space<vmem>>, %arg6: memref<10x2xf32, #tpu.memory_space<vmem>>, %arg7: memref<36x768xbf16, #tpu.memory_space<vmem>>) attributes {dimension_semantics = [], scalar_prefetch = 0 : i64, scratch_operands = 1 : i64, tpu.core_type = #tpu.core_type<tc>} {
    %cst = arith.constant 0.000000e+00 : bf16
    %0 = vector.broadcast %cst : bf16 to vector<36x768xbf16>
    %c0 = arith.constant 0 : index
    %c0_0 = arith.constant 0 : index
    %1 = vector.load %arg7[%c0, %c0_0] : memref<36x768xbf16, #tpu.memory_space<vmem>>, vector<36x768xbf16>
    tpu.vector_store %arg7[%c0, %c0_0], %0 {strides = array<i32>} : memref<36x768xbf16, #tpu.memory_space<vmem>>, vector<36x768xbf16>,
    %c0_1 = arith.constant 0 : index
    %c0_2 = arith.constant 0 : index
    %c0_3 = arith.constant 0 : index
    %2 = vector.load %arg0[%c0_1, %c0_2, %c0_3] : memref<2x4x324xf32, #tpu.memory_space<vmem>>, vector<1x4x286xf32>
    %3 = vector.shape_cast %2 : vector<1x4x286xf32> to vector<4x286xf32>
    %4 = arith.truncf %3 : vector<4x286xf32> to vector<4x286xbf16>
    %c0_4 = arith.constant 0 : index
    %c0_5 = arith.constant 0 : index
    %5 = vector.load %arg7[%c0_4, %c0_5] : memref<36x768xbf16, #tpu.memory_space<vmem>>, vector<4x286xbf16>
    tpu.vector_store %arg7[%c0_4, %c0_5], %4 {strides = array<i32>} : memref<36x768xbf16, #tpu.memory_space<vmem>>, vector<4x286xbf16>,
    %c0_6 = arith.constant 0 : index
    %c0_7 = arith.constant 0 : index
    %c1 = arith.constant 1 : index
    %6 = vector.load %arg0[%c0_6, %c0_7, %c1] : memref<2x4x324xf32, #tpu.memory_space<vmem>>, vector<1x4x286xf32>
    %7 = vector.shape_cast %6 : vector<1x4x286xf32> to vector<4x286xf32>
    %8 = arith.truncf %7 : vector<4x286xf32> to vector<4x286xbf16>
    %c4 = arith.constant 4 : index
    %c0_8 = arith.constant 0 : index
    %9 = vector.load %arg7[%c4, %c0_8] : memref<36x768xbf16, #tpu.memory_space<vmem>>, vector<4x286xbf16>
    tpu.vector_store %arg7[%c4, %c0_8], %8 {strides = array<i32>} : memref<36x768xbf16, #tpu.memory_space<vmem>>, vector<4x286xbf16>,
    %c0_9 = arith.constant 0 : index
    %c0_10 = arith.constant 0 : index
    %c2 = arith.constant 2 : index
    %10 = vector.load %arg0[%c0_9, %c0_10, %c2] : memref<2x4x324xf32, #tpu.memory_space<vmem>>, vector<1x4x286xf32>
    %11 = vector.shape_cast %10 : vector<1x4x286xf32> to vector<4x286xf32>
    %12 = arith.truncf %11 : vector<4x286xf32> to vector<4x286xbf16>
    %c8 = arith.constant 8 : index
    %c0_11 = arith.constant 0 : index
    %13 = vector.load %arg7[%c8, %c0_11] : memref<36x768xbf16, #tpu.memory_space<vmem>>, vector<4x286xbf16>
    tpu.vector_store %arg7[%c8, %c0_11], %12 {strides = array<i32>} : memref<36x768xbf16, #tpu.memory_space<vmem>>, vector<4x286xbf16>,
    %c0_12 = arith.constant 0 : index
    %c0_13 = arith.constant 0 : index
    %c18 = arith.constant 18 : index
    %14 = vector.load %arg0[%c0_12, %c0_13, %c18] : memref<2x4x324xf32, #tpu.memory_space<vmem>>, vector<1x4x286xf32>
    %15 = vector.shape_cast %14 : vector<1x4x286xf32> to vector<4x286xf32>
    %16 = arith.truncf %15 : vector<4x286xf32> to vector<4x286xbf16>
    %c12 = arith.constant 12 : index
    %c0_14 = arith.constant 0 : index
    %17 = vector.load %arg7[%c12, %c0_14] : memref<36x768xbf16, #tpu.memory_space<vmem>>, vector<4x286xbf16>
    tpu.vector_store %arg7[%c12, %c0_14], %16 {strides = array<i32>} : memref<36x768xbf16, #tpu.memory_space<vmem>>, vector<4x286xbf16>,
    %c0_15 = arith.constant 0 : index
    %c0_16 = arith.constant 0 : index
    %c19 = arith.constant 19 : index
    %18 = vector.load %arg0[%c0_15, %c0_16, %c19] : memref<2x4x324xf32, #tpu.memory_space<vmem>>, vector<1x4x286xf32>
    %19 = vector.shape_cast %18 : vector<1x4x286xf32> to vector<4x286xf32>
    %20 = arith.truncf %19 : vector<4x286xf32> to vector<4x286xbf16>
    %c16 = arith.constant 16 : index
    %c0_17 = arith.constant 0 : index
    %21 = vector.load %arg7[%c16, %c0_17] : memref<36x768xbf16, #tpu.memory_space<vmem>>, vector<4x286xbf16>
    tpu.vector_store %arg7[%c16, %c0_17], %20 {strides = array<i32>} : memref<36x768xbf16, #tpu.memory_space<vmem>>, vector<4x286xbf16>,
    %c0_18 = arith.constant 0 : index
    %c0_19 = arith.constant 0 : index
    %c20 = arith.constant 20 : index
    %22 = vector.load %arg0[%c0_18, %c0_19, %c20] : memref<2x4x324xf32, #tpu.memory_space<vmem>>, vector<1x4x286xf32>
    %23 = vector.shape_cast %22 : vector<1x4x286xf32> to vector<4x286xf32>
    %24 = arith.truncf %23 : vector<4x286xf32> to vector<4x286xbf16>
    %c20_20 = arith.constant 20 : index
    %c0_21 = arith.constant 0 : index
    %25 = vector.load %arg7[%c20_20, %c0_21] : memref<36x768xbf16, #tpu.memory_space<vmem>>, vector<4x286xbf16>
    tpu.vector_store %arg7[%c20_20, %c0_21], %24 {strides = array<i32>} : memref<36x768xbf16, #tpu.memory_space<vmem>>, vector<4x286xbf16>,
    %c0_22 = arith.constant 0 : index
    %c0_23 = arith.constant 0 : index
    %c36 = arith.constant 36 : index
    %26 = vector.load %arg0[%c0_22, %c0_23, %c36] : memref<2x4x324xf32, #tpu.memory_space<vmem>>, vector<1x4x286xf32>
    %27 = vector.shape_cast %26 : vector<1x4x286xf32> to vector<4x286xf32>
    %28 = arith.truncf %27 : vector<4x286xf32> to vector<4x286xbf16>
    %c24 = arith.constant 24 : index
    %c0_24 = arith.constant 0 : index
    %29 = vector.load %arg7[%c24, %c0_24] : memref<36x768xbf16, #tpu.memory_space<vmem>>, vector<4x286xbf16>
    tpu.vector_store %arg7[%c24, %c0_24], %28 {strides = array<i32>} : memref<36x768xbf16, #tpu.memory_space<vmem>>, vector<4x286xbf16>,
    %c0_25 = arith.constant 0 : index
    %c0_26 = arith.constant 0 : index
    %c37 = arith.constant 37 : index
    %30 = vector.load %arg0[%c0_25, %c0_26, %c37] : memref<2x4x324xf32, #tpu.memory_space<vmem>>, vector<1x4x286xf32>
    %31 = vector.shape_cast %30 : vector<1x4x286xf32> to vector<4x286xf32>
    %32 = arith.truncf %31 : vector<4x286xf32> to vector<4x286xbf16>
    %c28 = arith.constant 28 : index
    %c0_27 = arith.constant 0 : index
    %33 = vector.load %arg7[%c28, %c0_27] : memref<36x768xbf16, #tpu.memory_space<vmem>>, vector<4x286xbf16>
    tpu.vector_store %arg7[%c28, %c0_27], %32 {strides = array<i32>} : memref<36x768xbf16, #tpu.memory_space<vmem>>, vector<4x286xbf16>,
    %c0_28 = arith.constant 0 : index
    %c0_29 = arith.constant 0 : index
    %c38 = arith.constant 38 : index
    %34 = vector.load %arg0[%c0_28, %c0_29, %c38] : memref<2x4x324xf32, #tpu.memory_space<vmem>>, vector<1x4x286xf32>
    %35 = vector.shape_cast %34 : vector<1x4x286xf32> to vector<4x286xf32>
    %36 = arith.truncf %35 : vector<4x286xf32> to vector<4x286xbf16>
    %c32 = arith.constant 32 : index
    %c0_30 = arith.constant 0 : index
    %37 = vector.load %arg7[%c32, %c0_30] : memref<36x768xbf16, #tpu.memory_space<vmem>>, vector<4x286xbf16>
    tpu.vector_store %arg7[%c32, %c0_30], %36 {strides = array<i32>} : memref<36x768xbf16, #tpu.memory_space<vmem>>, vector<4x286xbf16>,
    %c1_31 = arith.constant 1 : index
    %c0_32 = arith.constant 0 : index
    %c0_33 = arith.constant 0 : index
    %38 = vector.load %arg0[%c1_31, %c0_32, %c0_33] : memref<2x4x324xf32, #tpu.memory_space<vmem>>, vector<1x4x286xf32>
    %39 = vector.shape_cast %38 : vector<1x4x286xf32> to vector<4x286xf32>
    %40 = arith.truncf %39 : vector<4x286xf32> to vector<4x286xbf16>
    %c0_34 = arith.constant 0 : index
    %c384 = arith.constant 384 : index
    %41 = vector.load %arg7[%c0_34, %c384] : memref<36x768xbf16, #tpu.memory_space<vmem>>, vector<4x286xbf16>
    tpu.vector_store %arg7[%c0_34, %c384], %40 {strides = array<i32>} : memref<36x768xbf16, #tpu.memory_space<vmem>>, vector<4x286xbf16>,
    %c1_35 = arith.constant 1 : index
    %c0_36 = arith.constant 0 : index
    %c1_37 = arith.constant 1 : index
    %42 = vector.load %arg0[%c1_35, %c0_36, %c1_37] : memref<2x4x324xf32, #tpu.memory_space<vmem>>, vector<1x4x286xf32>
    %43 = vector.shape_cast %42 : vector<1x4x286xf32> to vector<4x286xf32>
    %44 = arith.truncf %43 : vector<4x286xf32> to vector<4x286xbf16>
    %c4_38 = arith.constant 4 : index
    %c384_39 = arith.constant 384 : index
    %45 = vector.load %arg7[%c4_38, %c384_39] : memref<36x768xbf16, #tpu.memory_space<vmem>>, vector<4x286xbf16>
    tpu.vector_store %arg7[%c4_38, %c384_39], %44 {strides = array<i32>} : memref<36x768xbf16, #tpu.memory_space<vmem>>, vector<4x286xbf16>,
    %c1_40 = arith.constant 1 : index
    %c0_41 = arith.constant 0 : index
    %c2_42 = arith.constant 2 : index
    %46 = vector.load %arg0[%c1_40, %c0_41, %c2_42] : memref<2x4x324xf32, #tpu.memory_space<vmem>>, vector<1x4x286xf32>
    %47 = vector.shape_cast %46 : vector<1x4x286xf32> to vector<4x286xf32>
    %48 = arith.truncf %47 : vector<4x286xf32> to vector<4x286xbf16>
    %c8_43 = arith.constant 8 : index
    %c384_44 = arith.constant 384 : index
    %49 = vector.load %arg7[%c8_43, %c384_44] : memref<36x768xbf16, #tpu.memory_space<vmem>>, vector<4x286xbf16>
    tpu.vector_store %arg7[%c8_43, %c384_44], %48 {strides = array<i32>} : memref<36x768xbf16, #tpu.memory_space<vmem>>, vector<4x286xbf16>,
    %c1_45 = arith.constant 1 : index
    %c0_46 = arith.constant 0 : index
    %c18_47 = arith.constant 18 : index
    %50 = vector.load %arg0[%c1_45, %c0_46, %c18_47] : memref<2x4x324xf32, #tpu.memory_space<vmem>>, vector<1x4x286xf32>
    %51 = vector.shape_cast %50 : vector<1x4x286xf32> to vector<4x286xf32>
    %52 = arith.truncf %51 : vector<4x286xf32> to vector<4x286xbf16>
    %c12_48 = arith.constant 12 : index
    %c384_49 = arith.constant 384 : index
    %53 = vector.load %arg7[%c12_48, %c384_49] : memref<36x768xbf16, #tpu.memory_space<vmem>>, vector<4x286xbf16>
    tpu.vector_store %arg7[%c12_48, %c384_49], %52 {strides = array<i32>} : memref<36x768xbf16, #tpu.memory_space<vmem>>, vector<4x286xbf16>,
    %c1_50 = arith.constant 1 : index
    %c0_51 = arith.constant 0 : index
    %c19_52 = arith.constant 19 : index
    %54 = vector.load %arg0[%c1_50, %c0_51, %c19_52] : memref<2x4x324xf32, #tpu.memory_space<vmem>>, vector<1x4x286xf32>
    %55 = vector.shape_cast %54 : vector<1x4x286xf32> to vector<4x286xf32>
    %56 = arith.truncf %55 : vector<4x286xf32> to vector<4x286xbf16>
    %c16_53 = arith.constant 16 : index
    %c384_54 = arith.constant 384 : index
    %57 = vector.load %arg7[%c16_53, %c384_54] : memref<36x768xbf16, #tpu.memory_space<vmem>>, vector<4x286xbf16>
    tpu.vector_store %arg7[%c16_53, %c384_54], %56 {strides = array<i32>} : memref<36x768xbf16, #tpu.memory_space<vmem>>, vector<4x286xbf16>,
    %c1_55 = arith.constant 1 : index
    %c0_56 = arith.constant 0 : index
    %c20_57 = arith.constant 20 : index
    %58 = vector.load %arg0[%c1_55, %c0_56, %c20_57] : memref<2x4x324xf32, #tpu.memory_space<vmem>>, vector<1x4x286xf32>
    %59 = vector.shape_cast %58 : vector<1x4x286xf32> to vector<4x286xf32>
    %60 = arith.truncf %59 : vector<4x286xf32> to vector<4x286xbf16>
    %c20_58 = arith.constant 20 : index
    %c384_59 = arith.constant 384 : index
    %61 = vector.load %arg7[%c20_58, %c384_59] : memref<36x768xbf16, #tpu.memory_space<vmem>>, vector<4x286xbf16>
    tpu.vector_store %arg7[%c20_58, %c384_59], %60 {strides = array<i32>} : memref<36x768xbf16, #tpu.memory_space<vmem>>, vector<4x286xbf16>,
    %c1_60 = arith.constant 1 : index
    %c0_61 = arith.constant 0 : index
    %c36_62 = arith.constant 36 : index
    %62 = vector.load %arg0[%c1_60, %c0_61, %c36_62] : memref<2x4x324xf32, #tpu.memory_space<vmem>>, vector<1x4x286xf32>
    %63 = vector.shape_cast %62 : vector<1x4x286xf32> to vector<4x286xf32>
    %64 = arith.truncf %63 : vector<4x286xf32> to vector<4x286xbf16>
    %c24_63 = arith.constant 24 : index
    %c384_64 = arith.constant 384 : index
    %65 = vector.load %arg7[%c24_63, %c384_64] : memref<36x768xbf16, #tpu.memory_space<vmem>>, vector<4x286xbf16>
    tpu.vector_store %arg7[%c24_63, %c384_64], %64 {strides = array<i32>} : memref<36x768xbf16, #tpu.memory_space<vmem>>, vector<4x286xbf16>,
    %c1_65 = arith.constant 1 : index
    %c0_66 = arith.constant 0 : index
    %c37_67 = arith.constant 37 : index
    %66 = vector.load %arg0[%c1_65, %c0_66, %c37_67] : memref<2x4x324xf32, #tpu.memory_space<vmem>>, vector<1x4x286xf32>
    %67 = vector.shape_cast %66 : vector<1x4x286xf32> to vector<4x286xf32>
    %68 = arith.truncf %67 : vector<4x286xf32> to vector<4x286xbf16>
    %c28_68 = arith.constant 28 : index
    %c384_69 = arith.constant 384 : index
    %69 = vector.load %arg7[%c28_68, %c384_69] : memref<36x768xbf16, #tpu.memory_space<vmem>>, vector<4x286xbf16>
    tpu.vector_store %arg7[%c28_68, %c384_69], %68 {strides = array<i32>} : memref<36x768xbf16, #tpu.memory_space<vmem>>, vector<4x286xbf16>,
    %c1_70 = arith.constant 1 : index
    %c0_71 = arith.constant 0 : index
    %c38_72 = arith.constant 38 : index
    %70 = vector.load %arg0[%c1_70, %c0_71, %c38_72] : memref<2x4x324xf32, #tpu.memory_space<vmem>>, vector<1x4x286xf32>
    %71 = vector.shape_cast %70 : vector<1x4x286xf32> to vector<4x286xf32>
    %72 = arith.truncf %71 : vector<4x286xf32> to vector<4x286xbf16>
    %c32_73 = arith.constant 32 : index
    %c384_74 = arith.constant 384 : index
    %73 = vector.load %arg7[%c32_73, %c384_74] : memref<36x768xbf16, #tpu.memory_space<vmem>>, vector<4x286xbf16>
    tpu.vector_store %arg7[%c32_73, %c384_74], %72 {strides = array<i32>} : memref<36x768xbf16, #tpu.memory_space<vmem>>, vector<4x286xbf16>,
    %c0_75 = arith.constant 0 : index
    %c0_76 = arith.constant 0 : index
    %74 = vector.load %arg1[%c0_75, %c0_76] : memref<8x36xbf16, #tpu.memory_space<vmem>>, vector<8x36xbf16>
    %c0_77 = arith.constant 0 : index
    %c0_78 = arith.constant 0 : index
    %75 = vector.load %arg7[%c0_77, %c0_78] : memref<36x768xbf16, #tpu.memory_space<vmem>>, vector<36x768xbf16>
    %cst_79 = arith.constant dense<0.000000e+00> : vector<8x768xf32>
    %76 = tpu.matmul %74, %75, %cst_79 {dimension_numbers = #tpu.dot_dimension_numbers<[1], [0], [0], [1], [0, 0, 1, 1], [], []>} : vector<8x36xbf16>, vector<36x768xbf16>, vector<8x768xf32> -> vector<8x768xf32>
    %c0_80 = arith.constant 0 : index
    %c0_81 = arith.constant 0 : index
    %77 = vector.load %arg2[%c0_80, %c0_81] : memref<8x1xf32, #tpu.memory_space<vmem>>, vector<8x1xf32>
    %78 = vector.broadcast %77 : vector<8x1xf32> to vector<8x768xf32>
    %79 = arith.addf %76, %78 : vector<8x768xf32>
    %cst_82 = arith.constant 0.000000e+00 : f32
    %80 = vector.broadcast %cst_82 : f32 to vector<8x768xf32>
    %81 = arith.maximumf %79, %80 : vector<8x768xf32>
    %c0_83 = arith.constant 0 : index
    %c0_84 = arith.constant 0 : index
    %82 = vector.load %arg3[%c0_83, %c0_84] : memref<1x384xf32, #tpu.memory_space<vmem>>, vector<1x384xf32>
    %83 = vector.extract_strided_slice %81 {offsets = [0, 0], sizes = [8, 384], strides = [1, 1]} : vector<8x768xf32> to vector<8x384xf32>
    %84 = vector.broadcast %82 : vector<1x384xf32> to vector<8x384xf32>
    %85 = arith.mulf %83, %84 : vector<8x384xf32>
    %cst_85 = arith.constant dense<0.000000e+00> : vector<8xf32>
    %86 = vector.multi_reduction <add>, %85, %cst_85 [1] : vector<8x384xf32> to vector<8xf32>
    %87 = vector.shape_cast %86 : vector<8xf32> to vector<8x1xf32>
    %88 = vector.extract_strided_slice %81 {offsets = [0, 384], sizes = [8, 384], strides = [1, 1]} : vector<8x768xf32> to vector<8x384xf32>
    %89 = vector.broadcast %82 : vector<1x384xf32> to vector<8x384xf32>
    %90 = arith.mulf %88, %89 : vector<8x384xf32>
    %cst_86 = arith.constant dense<0.000000e+00> : vector<8xf32>
    %91 = vector.multi_reduction <add>, %90, %cst_86 [1] : vector<8x384xf32> to vector<8xf32>
    %92 = vector.shape_cast %91 : vector<8xf32> to vector<8x1xf32>
    %93 = tpu.concatenate %87, %92 in 1 : vector<8x1xf32>, vector<8x1xf32> -> vector<8x2xf32>
    %c0_87 = arith.constant 0 : index
    %c0_88 = arith.constant 0 : index
    %94 = vector.load %arg4[%c0_87, %c0_88] : memref<10x8xf32, #tpu.memory_space<vmem>>, vector<10x8xf32>
    %cst_89 = arith.constant dense<0.000000e+00> : vector<10x2xf32>
    %95 = tpu.matmul %94, %93, %cst_89 {dimension_numbers = #tpu.dot_dimension_numbers<[1], [0], [0], [1], [0, 0, 1, 1], [], []>} : vector<10x8xf32>, vector<8x2xf32>, vector<10x2xf32> -> vector<10x2xf32>
    %c0_90 = arith.constant 0 : index
    %c0_91 = arith.constant 0 : index
    %96 = vector.load %arg5[%c0_90, %c0_91] : memref<10x1xf32, #tpu.memory_space<vmem>>, vector<10x1xf32>
    %97 = vector.broadcast %96 : vector<10x1xf32> to vector<10x2xf32>
    %98 = arith.addf %95, %97 : vector<10x2xf32>
    %c0_92 = arith.constant 0 : index
    %c0_93 = arith.constant 0 : index
    %99 = vector.load %arg6[%c0_92, %c0_93] : memref<10x2xf32, #tpu.memory_space<vmem>>, vector<10x2xf32>
    tpu.vector_store %arg6[%c0_92, %c0_93], %98 {strides = array<i32>} : memref<10x2xf32, #tpu.memory_space<vmem>>, vector<10x2xf32>,
    return
  }
}

</mosaic_0001>

<bundles_post_ra>
// kernel: my_model_forward.1
= control target key start
LH: loop header
LB: loop body
LE: loop exit
PB: predicated region body
PF: predicated region fallthrough
CT: control target
= control target key end

     0   :  { %v1099_v3 = vmov 0   ;;  %s1100_s29 = smov 90   ;;  %s1101_s30 = smov 109   ;;  %vm58_vm0 = vcmask 238592   ;;  %vm84_vm1 = vcmask 1043456   ;;  %vm296_vm2 = vcmask 736256   ;;  %s1354_s0 = inlined_call_operand.vmem [shape: f32[2,4,324], index: 0, kind: input, shape index: {}]   ;;  %s1355_s2 = inlined_call_operand.vmem [shape: f32[8,1], index: 2, kind: input, shape index: {}]   ;;  %s1356_s1 = inlined_call_operand.vmem [shape: bf16[8,36], index: 1, kind: input, shape index: {}]   ;;  %s1357_s3 = inlined_call_operand.vmem [shape: f32[1,384], index: 3, kind: input, shape index: {}]   ;;  %s1358_s4 = inlined_call_operand.vmem [shape: f32[10,8], index: 4, kind: input, shape index: {}]   ;;  %s1359_s5 = inlined_call_operand.vmem [shape: f32[10,1], index: 5, kind: input, shape index: {}]   ;;  %s1360_s6 = inlined_call_operand.vmem [shape: f32[10,2], index: 6, kind: output, shape index: {}]  }
   0x1   :  { %v274_v0 = vld [vmem:[%s1354_s0 + $0x8] sm:$0xf]  ;;  %v273_v2 = vld [vmem:[%s1354_s0] sm:$0xff]  ;;  %37 = vst [vmem:[#allocation2 + $0x68] sm:$0x33] %v1099_v3  ;;  %24 = vst [vmem:[#allocation2] sm:$0xff] %v1099_v3  ;;  %707 = vmatprep.mubr.bf16.mxu0 %v1099_v3  ;;  %748 = vmatprep.mubr.bf16.mxu1 %v1099_v3 }
   0x2   :  { %v154_v1 = vld [vmem:[%s1354_s0 + $0x8] sm:$0xf]  ;;  %25 = vst [vmem:[#allocation2 + $0x8] sm:$0xff] %v1099_v3  ;;  %26 = vst [vmem:[#allocation2 + $0x10] sm:$0xff] %v1099_v3  ;;  %v1038_v4 = vpack.c.bf16 %v274_v0, %v274_v0  ;;  %v276_v6 = vcombine.high %v273_v2, %v273_v2  ;;  %1074 = vset.pattern.permute.xlu0 %v1099_v3  ;;  %1075 = vset.pattern.permute.xlu1 %v1099_v3  ;;  %v991_v10 = vld [vmem:[%s1354_s0 + $0xc] sm:$0xff]  ;;  %s1102_s15 = smov 108  }
   0x3   :  { %27 = vst [vmem:[#allocation2 + $0x18] sm:$0xff] %v1099_v3  ;;  %28 = vst [vmem:[#allocation2 + $0x20] sm:$0xff] %v1099_v3  ;;  %v1030_v5 = vpack.c.bf16 %v154_v1, %v154_v1  ;;  %v183_v7 = vld [vmem:[%s1354_s0 + $0x8] sm:$0xf]  ;;  %v530_v13 = vcombine.high %v991_v10, %v991_v10  ;;  %s1103_s18 = smov 92   ;;  %s1104_s19 = smov 91  }
   0x4   :  { %29 = vst [vmem:[#allocation2 + $0x28] sm:$0xff] %v1099_v3  ;;  %30 = vst [vmem:[#allocation2 + $0x30] sm:$0xff] %v1099_v3  ;;  %291 = vrot.lane.b32.xlu0 %v1038_v4, %s1100_s29  ;;  %v1037_v8 = vpack.c.bf16 %v276_v6, %v273_v2  ;;  %v1032_v9 = vpack.c.bf16 %v183_v7, %v183_v7  ;;  %v214_v14 = vld [vmem:[%s1354_s0 + $0x8] sm:$0xf]  ;;  %s1105_s24 = smov 127   ;;  %s1106_s25 = smov 126  }
   0x5   :  { %31 = vst [vmem:[#allocation2 + $0x38] sm:$0xff] %v1099_v3  ;;  %32 = vst [vmem:[#allocation2 + $0x40] sm:$0xff] %v1099_v3  ;;  %171 = vrot.lane.b32.xlu1 %v1030_v5, %s1101_s30  ;;  %v243_v15 = vld [vmem:[%s1354_s0 + $0x8] sm:$0xf]  ;;  %v1187_v16 = vpack.c.bf16 %v530_v13, %v991_v10  ;;  %v1034_v18 = vpack.c.bf16 %v214_v14, %v214_v14  ;;  %v992_v30 = vld [vmem:[%s1354_s0 + $0x14] sm:$0xf] }
   0x6   :  { %33 = vst [vmem:[#allocation2 + $0x48] sm:$0xff] %v1099_v3  ;;  %34 = vst [vmem:[#allocation2 + $0x50] sm:$0xff] %v1099_v3  ;;  %v198_v11 = vrot.slane %v1037_v8, 6  ;;  %v199_v12 = vrot.slane %v1032_v9, 6  ;;  %v40_v17 = vld [vmem:[%s1354_s0 + $0x8] sm:$0xf]  ;;  %v1036_v19 = vpack.c.bf16 %v243_v15, %v243_v15  ;;  %v1056_v31 = vpack.c.bf16 %v992_v30, %v992_v30 }
   0x7   :  { %35 = vst [vmem:[#allocation2 + $0x58] sm:$0xff] %v1099_v3  ;;  %36 = vst [vmem:[#allocation2 + $0x60] sm:$0x33] %v1099_v3  ;;  %v61_v20 = vld [vmem:[%s1354_s0 + $0x8] sm:$0xf]  ;;  %v1022_v21 = vpack.c.bf16 %v40_v17, %v40_v17  ;;  %s1107_s28 = smov 110  }
   0x8   :  { %38 = vst [vmem:[#allocation2 + $0x70] sm:$0x33] %v1099_v3  ;;  %57 = vst [vmem:[#allocation2] sm:$0x33] %v1037_v8  ;;  %289 = vrot.lane.b32.xlu0 %v1037_v8, %s1100_s29  ;;  %v259_v22 = vrot.slane %v1036_v19, 6  ;;  %v1024_v23 = vpack.c.bf16 %v61_v20, %v61_v20  ;;  %v455_v37 = vrot.slane %v1187_v16, 6 }
   0x9   :  { %169 = vrot.lane.b32.xlu1 %v1037_v8, %s1101_s30  ;;  %321 = vst [vmem:[#allocation2 + $0xc] sm:$0x33] %v1187_v16  ;;  %59 = vst.msk [vmem:[#allocation2 + $0x8] sm:$0x3] %vm58_vm0, %v1022_v21  ;;  %v94_v25 = vld [vmem:[%s1354_s0 + $0x8] sm:$0xf] }
   0xa   :  { %v77_v24 = vrot.slane %v1024_v23, 6  ;;  %v123_v26 = vld [vmem:[%s1354_s0 + $0x8] sm:$0xf]  ;;  %v1026_v27 = vpack.c.bf16 %v94_v25, %v94_v25  ;;  %v976_v32 = vld [vmem:[%s1354_s0 + $0x14] sm:$0xf]  ;;  %v571_v53 = vld [vmem:[%s1355_s2] sm:$0xff] }
   0xb   :  { %v1028_v28 = vpack.c.bf16 %v123_v26, %v123_v26  ;;  %v980_v33 = vld [vmem:[%s1354_s0 + $0x14] sm:$0xf]  ;;  %v1048_v34 = vpack.c.bf16 %v976_v32, %v976_v32  ;;  %vm176_vm3 = vcmask 891904   ;;  %vm91_vm4 = vcmask 240642  }
   0xc   :  { %200 = vrot.lane.b32.xlu0 %v198_v11, %s1102_s15  ;;  %v1050_v35 = vpack.c.bf16 %v980_v33, %v980_v33  ;;  %v984_v38 = vld [vmem:[%s1354_s0 + $0x14] sm:$0xf]  ;;  %vm207_vm5 = vcmask 883712   ;;  %vm236_vm6 = vcmask 752640   ;;  %vm267_vm7 = vcmask 744448  }
   0xd   :  { %202 = vrot.lane.b32.xlu1 %v199_v12, %s1102_s15  ;;  %v139_v29 = vrot.slane %v1028_v28, 6  ;;  %v988_v39 = vld [vmem:[%s1354_s0 + $0x14] sm:$0xf]  ;;  %v1052_v41 = vpack.c.bf16 %v984_v38, %v984_v38  ;;  %vm656_vm8 = vcmask 1041408   ;;  %vm86_vm9 = vcmask 1039360  }
   0xe   :  { %v456_v36 = vrot.slane %v1050_v35, 6  ;;  %v960_v40 = vld [vmem:[%s1354_s0 + $0x14] sm:$0xf]  ;;  %v1054_v42 = vpack.c.bf16 %v988_v39, %v988_v39  ;;  %vm116_vm10 = vcmask 1031168   ;;  %vm147_vm11 = vcmask 900096  }
   0xf   :  { %v1040_v43 = vpack.c.bf16 %v960_v40, %v960_v40  ;;  %v964_v44 = vld [vmem:[%s1354_s0 + $0x14] sm:$0xf]  ;;  %vm652_vm12 = vcmask 293888   ;;  %vm851_vm13 = vcmask 64512   ;;  %vm835_vm14 = vcmask 7168  }
  0x10   :  { %229 = vrot.lane.b32.xlu0 %v1037_v8, %s1103_s18  ;;  %v514_v45 = vrot.slane %v1054_v42, 6  ;;  %v1042_v46 = vpack.c.bf16 %v964_v44, %v964_v44  ;;  %v968_v48 = vld [vmem:[%s1354_s0 + $0x14] sm:$0xf]  ;;  %vm935_vm15 = vcmask 9216  }
  0x11   :  { %231 = vrot.lane.b32.xlu1 %v1034_v18, %s1103_s18  ;;  %322 = vst.msk [vmem:[#allocation2 + $0x14] sm:$0x3] %vm58_vm0, %v1040_v43  ;;  %v972_v49 = vld [vmem:[%s1354_s0 + $0x14] sm:$0xf]  ;;  %v1044_v50 = vpack.c.bf16 %v968_v48, %v968_v48 }
  0x12   :  { %v340_v47 = vrot.slane %v1042_v46, 6  ;;  %v1046_v51 = vpack.c.bf16 %v972_v49, %v972_v49 }
  0x14   :  { %260 = vrot.lane.b32.xlu0 %v198_v11, %s1104_s19  ;;  %v398_v52 = vrot.slane %v1046_v51, 6 }
  0x15   :  { %262 = vrot.lane.b32.xlu1 %v259_v22, %s1104_s19 }
  0x18   :  { %78 = vrot.lane.b32.xlu0 %v198_v11, %s1105_s24 }
  0x19   :  { %80 = vrot.lane.b32.xlu1 %v77_v24, %s1105_s24 }
  0x1c   :  { %109 = vrot.lane.b32.xlu0 %v1037_v8, %s1106_s25 }
  0x1d   :  { %111 = vrot.lane.b32.xlu1 %v1026_v27, %s1106_s25 }
  0x20   :  { %140 = vrot.lane.b32.xlu0 %v198_v11, %s1107_s28 }
  0x21   :  { %142 = vrot.lane.b32.xlu1 %v139_v29, %s1107_s28 }
  0x24   :  { %543 = vrot.lane.b32.xlu0 %v1187_v16, %s1100_s29 }
  0x25   :  { %545 = vrot.lane.b32.xlu1 %v1056_v31, %s1100_s29 }
  0x28   :  { %427 = vrot.lane.b32.xlu0 %v1187_v16, %s1101_s30 }
  0x29   :  { %429 = vrot.lane.b32.xlu1 %v1048_v34, %s1101_s30 }
  0x2c   :  { %457 = vrot.lane.b32.xlu0 %v455_v37, %s1102_s15 }
  0x2d   :  { %459 = vrot.lane.b32.xlu1 %v456_v36, %s1102_s15 }
  0x30   :  { %485 = vrot.lane.b32.xlu0 %v1187_v16, %s1103_s18 }
  0x31   :  { %487 = vrot.lane.b32.xlu1 %v1052_v41, %s1103_s18 }
  0x34   :  { %515 = vrot.lane.b32.xlu0 %v455_v37, %s1104_s19 }
  0x35   :  { %517 = vrot.lane.b32.xlu1 %v514_v45, %s1104_s19 }
  0x38   :  { %341 = vrot.lane.b32.xlu0 %v455_v37, %s1105_s24 }
  0x39   :  { %343 = vrot.lane.b32.xlu1 %v340_v47, %s1105_s24 }
  0x3c   :  { %369 = vrot.lane.b32.xlu0 %v1187_v16, %s1106_s25 }
  0x3d   :  { %371 = vrot.lane.b32.xlu1 %v1044_v50, %s1106_s25 }
  0x40   :  { %399 = vrot.lane.b32.xlu0 %v455_v37, %s1107_s28 }
  0x41   :  { %401 = vrot.lane.b32.xlu1 %v398_v52, %s1107_s28 }
  0x44   :  { %574 = vperm.xlu0 %1074, %v571_v53  }
  0x76   :  { %v292_v54 = vpop.permute.xlu0 %291 }
  0x77   :  { %v172_v55 = vpop.permute.xlu1 %171  ;;  %301 = vst.msk [vmem:[#allocation2 + $0x68] sm:$0x3] %vm58_vm0, %v292_v54  ;;  %v294_v58 = vrot.slane %v292_v54, 4 }
  0x78   :  { %181 = vst.msk [vmem:[#allocation2 + $0x38] sm:$0x3] %vm58_vm0, %v172_v55  ;;  %v174_v59 = vrot.slane %v172_v55, 4 }
  0x7a   :  { %v290_v56 = vpop.permute.xlu0 %289 }
  0x7b   :  { %v170_v57 = vpop.permute.xlu1 %169  ;;  %v293_v60 = vrot.slane %v290_v56, 4 }
  0x7c   :  { %v173_v61 = vrot.slane %v170_v57, 4 }
  0x7d   :  { %v295_v62 = vsel %vm84_vm1, %v293_v60, %v294_v58 }
  0x7e   :  { %v175_v63 = vsel %vm84_vm1, %v173_v61, %v174_v59  ;;  %v297_v0 = vsel %vm296_vm2, %v290_v56, %v295_v62  ;;  %v201_v2 = vpop.permute.xlu0 %200 }
  0x7f   :  { %v177_v1 = vsel %vm176_vm3, %v170_v57, %v175_v63  ;;  %v203_v4 = vpop.permute.xlu1 %202  ;;  %300 = vst [vmem:[#allocation2 + $0x60] sm:$0x33] %v297_v0  ;;  %v204_v5 = vrot.slane %v201_v2, 4 }
  0x80   :  { %180 = vst [vmem:[#allocation2 + $0x30] sm:$0x33] %v177_v1  ;;  %v205_v6 = vrot.slane %v203_v4, 4  ;;  %212 = vst.msk [vmem:[#allocation2 + $0x38] sm:$0xc] %vm91_vm4, %v203_v4 }
  0x82   :  { %v206_v7 = vsel %vm84_vm1, %v204_v5, %v205_v6  ;;  %v230_v9 = vpop.permute.xlu0 %229 }
  0x83   :  { %v208_v8 = vsel %vm207_vm5, %v201_v2, %v206_v7  ;;  %v232_v10 = vpop.permute.xlu1 %231  ;;  %v233_v11 = vrot.slane %v230_v9, 4  ;;  %v1304_v2 = vld [vmem:[%s1356_s1] sm:$0xf] }
  0x84   :  { %211 = vst [vmem:[#allocation2 + $0x30] sm:$0xcc] %v208_v8  ;;  %v234_v12 = vrot.slane %v232_v10, 4  ;;  %241 = vst.msk [vmem:[#allocation2 + $0x50] sm:$0x3] %vm58_vm0, %v232_v10 }
  0x86   :  { %v235_v13 = vsel %vm84_vm1, %v233_v11, %v234_v12  ;;  %v261_v15 = vpop.permute.xlu0 %260  ;;  %v568_v17 = vld [vmem:[#allocation2 + $0x60] sm:$0x33] }
  0x87   :  { %v237_v14 = vsel %vm236_vm6, %v230_v9, %v235_v13  ;;  %v263_v16 = vpop.permute.xlu1 %262  ;;  %v264_v18 = vrot.slane %v261_v15, 4  ;;  %v1008_v20 = vcombine.high %v568_v17, %v568_v17  ;;  %v1007_v21 = vcombine.low %v568_v17, %v568_v17 }
  0x88   :  { %240 = vst [vmem:[#allocation2 + $0x48] sm:$0x33] %v237_v14  ;;  %v265_v19 = vrot.slane %v263_v16, 4  ;;  %272 = vst.msk [vmem:[#allocation2 + $0x50] sm:$0xc] %vm91_vm4, %v263_v16 }
  0x89   :  { %1013 = vmatprep.subr.msk.bf16.mxu0 %vm656_vm8, %v1008_v20  ;;  %v658_v23 = vsel %vm656_vm8, %v1007_v21, 0 }
  0x8a   :  { %v266_v22 = vsel %vm84_vm1, %v264_v18, %v265_v19  ;;  %686 = vmatpush1.bf16.msra.mxu0 %v658_v23  ;;  %v79_v26 = vpop.permute.xlu0 %78 }
  0x8b   :  { %v268_v24 = vsel %vm267_vm7, %v261_v15, %v266_v22  ;;  %v81_v25 = vpop.permute.xlu1 %80  ;;  %v82_v28 = vrot.slane %v79_v26, 4 }
  0x8c   :  { %271 = vst [vmem:[#allocation2 + $0x48] sm:$0xcc] %v268_v24  ;;  %v83_v27 = vrot.slane %v81_v25, 4  ;;  %92 = vst.msk [vmem:[#allocation2 + $0x8] sm:$0xc] %vm91_vm4, %v81_v25 }
  0x8e   :  { %v85_v29 = vsel %vm84_vm1, %v82_v28, %v83_v27  ;;  %v110_v32 = vpop.permute.xlu0 %109 }
  0x8f   :  { %v87_v30 = vsel %vm86_vm9, %v79_v26, %v85_v29  ;;  %v112_v31 = vpop.permute.xlu1 %111  ;;  %v113_v34 = vrot.slane %v110_v32, 4 }
  0x90   :  { %90 = vst [vmem:[#allocation2] sm:$0xcc] %v87_v30  ;;  %v114_v33 = vrot.slane %v112_v31, 4  ;;  %121 = vst.msk [vmem:[#allocation2 + $0x20] sm:$0x3] %vm58_vm0, %v112_v31 }
  0x92   :  { %v115_v35 = vsel %vm84_vm1, %v113_v34, %v114_v33  ;;  %v141_v38 = vpop.permute.xlu0 %140 }
  0x93   :  { %v117_v36 = vsel %vm116_vm10, %v110_v32, %v115_v35  ;;  %v143_v37 = vpop.permute.xlu1 %142  ;;  %v1080_v39 = vld [vmem:[#allocation2 + $0x34] ss:$24 sps:$4 sm:$0xff]   ;;  %v1082_v40 = vld [vmem:[#allocation2 + $0x30] ss:$24 sps:$4 sm:$0xff]   ;;  %v144_v42 = vrot.slane %v141_v38, 4 }
  0x94   :  { %120 = vst [vmem:[#allocation2 + $0x18] sm:$0x33] %v117_v36  ;;  %v145_v41 = vrot.slane %v143_v37, 4  ;;  %152 = vst.msk [vmem:[#allocation2 + $0x20] sm:$0xc] %vm91_vm4, %v143_v37  ;;  %687 = vmatprep.subr.bf16.mxu0 %v1080_v39 }
  0x95   :  { %688 = vmatpush1.bf16.msra.mxu0 %v1082_v40 }
  0x96   :  { %v146_v43 = vsel %vm84_vm1, %v144_v42, %v145_v41  ;;  %v544_v46 = vpop.permute.xlu0 %543 }
  0x97   :  { %v148_v44 = vsel %vm147_vm11, %v141_v38, %v146_v43  ;;  %v546_v45 = vpop.permute.xlu1 %545  ;;  %v547_v48 = vrot.slane %v544_v46, 4  ;;  %v556_v59 = vld [vmem:[#allocation2] sm:$0xff]  ;;  %v1092_v43 = vld [vmem:[#allocation2 + $0x38] ss:$24 sps:$4 sm:$0xff]  }
  0x98   :  { %151 = vst [vmem:[#allocation2 + $0x18] sm:$0xcc] %v148_v44  ;;  %v548_v47 = vrot.slane %v546_v45, 4  ;;  %554 = vst.msk [vmem:[#allocation2 + $0x74] sm:$0x3] %vm58_vm0, %v546_v45 }
  0x9a   :  { %v549_v49 = vsel %vm84_vm1, %v547_v48, %v548_v47  ;;  %v428_v52 = vpop.permute.xlu0 %427 }
  0x9b   :  { %v550_v50 = vsel %vm296_vm2, %v544_v46, %v549_v49  ;;  %v430_v51 = vpop.permute.xlu1 %429  ;;  %v431_v54 = vrot.slane %v428_v52, 4  ;;  %v1098_v49 = vld [vmem:[#allocation2 + $0x8] ss:$24 sps:$4 sm:$0xff]  }
  0x9c   :  { %553 = vst [vmem:[#allocation2 + $0x6c] sm:$0x33] %v550_v50  ;;  %v432_v53 = vrot.slane %v430_v51, 4  ;;  %438 = vst.msk [vmem:[#allocation2 + $0x44] sm:$0x3] %vm58_vm0, %v430_v51 }
  0x9e   :  { %v433_v55 = vsel %vm84_vm1, %v431_v54, %v432_v53  ;;  %v458_v58 = vpop.permute.xlu0 %457  ;;  %v806_v54 = vlaneseq }
  0x9f   :  { %v434_v56 = vsel %vm176_vm3, %v428_v52, %v433_v55  ;;  %v460_v57 = vpop.permute.xlu1 %459  ;;  %v559_v60 = vld [vmem:[#allocation2 + $0x18] sm:$0xff]  ;;  %v461_v63 = vrot.slane %v458_v58, 4 }
  0xa0   :  { %v1083_v61 = vld [vmem:[#allocation2 + $0x4] ss:$24 sps:$4 sm:$0xff]   ;;  %437 = vst [vmem:[#allocation2 + $0x3c] sm:$0x33] %v434_v56  ;;  %v462_v62 = vrot.slane %v460_v57, 4  ;;  %v995_v0 = vcombine.low %v556_v59, %v559_v60  ;;  %v807_v55 = vshrl.u32 %v806_v54, 7 }
  0xa1   :  { %468 = vst.msk [vmem:[#allocation2 + $0x44] sm:$0xc] %vm91_vm4, %v460_v57  ;;  %689 = vmatprep.subr.bf16.mxu0 %v1083_v61 }
  0xa2   :  { %v463_v1 = vsel %vm84_vm1, %v461_v63, %v462_v62  ;;  %690 = vmatpush1.bf16.msra.mxu0 %v995_v0  ;;  %v486_v6 = vpop.permute.xlu0 %485  ;;  %v812_v57 = vsub.s32 1, %v807_v55  ;;  %v808_v59 = vsub.s32 0, %v807_v55  ;;  %v816_v63 = vsub.s32 2, %v807_v55 }
  0xa3   :  { %v464_v4 = vsel %vm207_vm5, %v458_v58, %v463_v1  ;;  %v488_v5 = vpop.permute.xlu1 %487  ;;  %v569_v7 = vld [vmem:[#allocation2 + $0x68] sm:$0x33]  ;;  %v570_v8 = vld [vmem:[#allocation2 + $0x70] sm:$0x33]  ;;  %v489_v10 = vrot.slane %v486_v6, 4 }
  0xa4   :  { %467 = vst [vmem:[#allocation2 + $0x3c] sm:$0xcc] %v464_v4  ;;  %v490_v9 = vrot.slane %v488_v5, 4  ;;  %496 = vst.msk [vmem:[#allocation2 + $0x5c] sm:$0x3] %vm58_vm0, %v488_v5  ;;  %v1010_v11 = vcombine.high %v569_v7, %v569_v7  ;;  %v1012_v12 = vcombine.high %v570_v8, %v570_v8  ;;  %v1009_v13 = vcombine.low %v569_v7, %v569_v7 }
  0xa5   :  { %1014 = vmatmul.mubr.msk.bf16.vlgmr.msra.gmra.mxu0 %vm652_vm12, %v1304_v2  ;;  %v1011_v14 = vcombine.low %v570_v8, %v570_v8  ;;  %v804_v58 = vld [vmem:[%s1357_s3] sm:$0x7] }
  0xa6   :  { %v491_v15 = vsel %vm84_vm1, %v489_v10, %v490_v9  ;;  %1015 = vmatprep.subr.msk.bf16.mxu1 %vm656_vm8, %v1010_v11  ;;  %1017 = vmatprep.subr.msk.bf16.mxu0 %vm656_vm8, %v1012_v12  ;;  %v664_v18 = vsel %vm656_vm8, %v1009_v13, 0  ;;  %v516_v19 = vpop.permute.xlu0 %515  ;;  %v813_v62 = vrot.slane %v804_v58, %v812_v57  ;;  %v809_v0 = vrot.slane %v804_v58, %v808_v59 }
  0xa7   :  { %v492_v16 = vsel %vm236_vm6, %v486_v6, %v491_v15  ;;  %v518_v17 = vpop.permute.xlu1 %517  ;;  %v670_v20 = vsel %vm656_vm8, %v1011_v14, 0  ;;  %789 = vmatprep.mubr.bf16.mxu0 %v1099_v3  ;;  %727 = vmatpush1.bf16.msra.mxu1 %v664_v18  ;;  %v519_v22 = vrot.slane %v516_v19, 4  ;;  %v817_v6 = vrot.slane %v804_v58, %v816_v63 }
  0xa8   :  { %495 = vst [vmem:[#allocation2 + $0x54] sm:$0x33] %v492_v16  ;;  %v520_v21 = vrot.slane %v518_v17, 4  ;;  %526 = vst.msk [vmem:[#allocation2 + $0x5c] sm:$0xc] %vm91_vm4, %v518_v17  ;;  %768 = vmatpush1.bf16.msra.mxu0 %v670_v20 }
  0xaa   :  { %v521_v23 = vsel %vm84_vm1, %v519_v22, %v520_v21  ;;  %v342_v26 = vpop.permute.xlu0 %341 }
  0xab   :  { %v522_v24 = vsel %vm267_vm7, %v516_v19, %v521_v23  ;;  %v344_v25 = vpop.permute.xlu1 %343  ;;  %v345_v28 = vrot.slane %v342_v26, 4 }
  0xac   :  { %525 = vst [vmem:[#allocation2 + $0x54] sm:$0xcc] %v522_v24  ;;  %v346_v27 = vrot.slane %v344_v25, 4  ;;  %352 = vst.msk [vmem:[#allocation2 + $0x14] sm:$0xc] %vm91_vm4, %v344_v25 }
  0xae   :  { %v347_v3 = vsel %vm84_vm1, %v345_v28, %v346_v27  ;;  %v370_v31 = vpop.permute.xlu0 %369 }
  0xaf   :  { %v348_v29 = vsel %vm86_vm9, %v342_v26, %v347_v3  ;;  %v372_v30 = vpop.permute.xlu1 %371  ;;  %v373_v33 = vrot.slane %v370_v31, 4  ;;  %v1091_v42 = vld [vmem:[#allocation2 + $0x44] ss:$24 sps:$4 sm:$0xff]  }
  0xb0   :  { %351 = vst [vmem:[#allocation2 + $0xc] sm:$0xcc] %v348_v29  ;;  %v374_v32 = vrot.slane %v372_v30, 4  ;;  %380 = vst.msk [vmem:[#allocation2 + $0x2c] sm:$0x3] %vm58_vm0, %v372_v30  ;;  %769 = vmatprep.subr.bf16.mxu0 %v1091_v42  ;;  %v837_v30 = vld [vmem:[%s1358_s4] sm:$0xff] }
  0xb1   :  { %vm933_vm0 = vcmask 15360  }
  0xb2   :  { %v375_v34 = vsel %vm84_vm1, %v373_v33, %v374_v32  ;;  %v400_v37 = vpop.permute.xlu0 %399  ;;  %v840_v32 = vld [vmem:[%s1359_s5 + $0x8] sm:$0x3] }
  0xb3   :  { %v376_v35 = vsel %vm116_vm10, %v370_v31, %v375_v34  ;;  %v402_v36 = vpop.permute.xlu1 %401  ;;  %v1087_v38 = vld [vmem:[#allocation2 + $0x3c] ss:$24 sps:$4 sm:$0xff]   ;;  %v403_v40 = vrot.slane %v400_v37, 4  ;;  %v1089_v41 = vld [vmem:[#allocation2 + $0x40] ss:$24 sps:$4 sm:$0xff]  }
  0xb4   :  { %379 = vst [vmem:[#allocation2 + $0x24] sm:$0x33] %v376_v35  ;;  %v404_v39 = vrot.slane %v402_v36, 4  ;;  %410 = vst.msk [vmem:[#allocation2 + $0x2c] sm:$0xc] %vm91_vm4, %v402_v36  ;;  %728 = vmatprep.subr.bf16.mxu1 %v1087_v38  ;;  %770 = vmatpush1.bf16.msra.mxu0 %v1089_v41  ;;  %v839_v31 = vld [vmem:[%s1359_s5] sm:$0xff] }
  0xb5   :  { %729 = vmatpush1.bf16.msra.mxu1 %v1092_v43  ;;  %v838_v36 = vld [vmem:[%s1358_s4 + $0x8] sm:$0x3] }
  0xb6   :  { %v405_v44 = vsel %vm84_vm1, %v403_v40, %v404_v39 }
  0xb7   :  { %v406_v45 = vsel %vm147_vm11, %v400_v37, %v405_v44 }
  0xb8   :  { %409 = vst [vmem:[#allocation2 + $0x24] sm:$0xcc] %v406_v45 }
  0xbb   :  { %v1097_v48 = vld [vmem:[#allocation2 + $0x14] ss:$24 sps:$4 sm:$0xff]  }
  0xbc   :  { %771 = vmatprep.subr.bf16.mxu0 %v1097_v48 }
  0xbf   :  { %v1093_v46 = vld [vmem:[#allocation2 + $0xc] ss:$24 sps:$4 sm:$0xff]   ;;  %v1095_v47 = vld [vmem:[#allocation2 + $0x10] ss:$24 sps:$4 sm:$0xff]   ;;  %v575_v56 = vpop.permute.xlu0 %574 }
  0xc0   :  { %730 = vmatprep.subr.bf16.mxu1 %v1093_v46  ;;  %772 = vmatpush1.bf16.msra.mxu0 %v1095_v47 }
  0xc1   :  { %731 = vmatpush1.bf16.msra.mxu1 %v1098_v49 }
  0xc3   :  { %1018 = vmatmul.mubr.msk.bf16.vlgmr.msra.gmra.mxu0 %vm652_vm12, %v1304_v2 }
  0xc4   :  { %1016 = vmatmul.mubr.msk.bf16.vlgmr.msra.gmra.mxu1 %vm652_vm12, %v1304_v2 }
  0xc5   :  { %1062 = vmatprep.mubr.msk.f32.mxu1 %vm851_vm13, %v837_v30 }
 0x165   :  { %v709_v50 = vpop.f32.mrf.mxu0 }
 0x166   :  { %v710_v60 = vadd.f32 %v709_v50, %v575_v56 }
 0x167   :  { %v711_v51 = vpop.f32.mrf.mxu0 }
 0x168   :  { %v712_v61 = vadd.f32 %v711_v51, %v575_v56  ;;  %v798_v1 = vmax.f32 %v710_v60, 0.0 }
 0x169   :  { %v713_v52 = vpop.f32.mrf.mxu0 }
 0x16a   :  { %v799_v2 = vmax.f32 %v712_v61, 0.0  ;;  %v821_v8 = vmul.f32 %v809_v0, %v798_v1 }
 0x16b   :  { %v714_v53 = vpop.f32.mrf.mxu0 }
 0x16c   :  { %v822_v9 = vmul.f32 %v813_v62, %v799_v2 }
 0x16e   :  { %v824_v21 = vadd.f32 %v822_v9, %v821_v8 }
 0x183   :  { %v791_v7 = vpop.f32.mrf.mxu0 }
 0x184   :  { %v750_v4 = vpop.f32.mrf.mxu1  ;;  %v792_v10 = vadd.f32 %v791_v7, %v575_v56 }
 0x185   :  { %v751_v5 = vadd.f32 %v750_v4, %v575_v56  ;;  %v793_v14 = vpop.f32.mrf.mxu0 }
 0x186   :  { %v752_v11 = vpop.f32.mrf.mxu1  ;;  %v802_v15 = vmax.f32 %v792_v10, 0.0  ;;  %v794_v16 = vadd.f32 %v793_v14, %v575_v56 }
 0x187   :  { %v800_v12 = vmax.f32 %v751_v5, 0.0  ;;  %v753_v13 = vadd.f32 %v752_v11, %v575_v56  ;;  %v795_v20 = vpop.f32.mrf.mxu0 }
 0x188   :  { %v754_v17 = vpop.f32.mrf.mxu1  ;;  %v829_v22 = vmul.f32 %v813_v62, %v802_v15  ;;  %v803_v23 = vmax.f32 %v794_v16, 0.0 }
 0x189   :  { %v823_v18 = vmul.f32 %v817_v6, %v800_v12  ;;  %v801_v19 = vmax.f32 %v753_v13, 0.0  ;;  %v796_v26 = vpop.f32.mrf.mxu0 }
 0x18a   :  { %v755_v24 = vpop.f32.mrf.mxu1  ;;  %v830_v28 = vmul.f32 %v817_v6, %v803_v23 }
 0x18b   :  { %v828_v25 = vmul.f32 %v809_v0, %v801_v19  ;;  %v825_v27 = vadd.f32 %v824_v21, %v823_v18 }
 0x18d   :  { %826 = vadd.xlane.f32.xlu1 %v825_v27  ;;  %v831_v3 = vadd.f32 %v829_v22, %v828_v25 }
 0x18f   :  { %v832_v29 = vadd.f32 %v831_v3, %v830_v28 }
 0x191   :  { %833 = vadd.xlane.f32.xlu0 %v832_v29 }
 0x19e   :  { %843 = vperm.xlu1 %1075, %v839_v31  }
 0x1a7   :  { %848 = vperm.xlu0 %1074, %v840_v32  }
 0x216   :  { %v827_v33 = vpop.xlane.xlu1 %826 }
 0x21a   :  { %v834_v34 = vpop.xlane.xlu0 %833  ;;  %v844_v39 = vpop.permute.xlu1 %843 }
 0x21b   :  { %v836_v35 = vsel %vm835_vm14, %v827_v33, %v834_v34 }
 0x21c   :  { %1060 = vmatprep.subr.mxu1 %v836_v35 }
 0x21d   :  { %1061 = vmatpush3.msra.mxu1 %v836_v35 }
 0x21e   :  { %1063 = vmatmul.mubr.msk.f32.vlgmr.msra.gmra.mxu1 %vm851_vm13, %v838_v36 }
 0x222   :  { %v849_v37 = vpop.permute.xlu0 %848 }
 0x2de   :  { %v1064_v38 = vpop.f32.mrf.mxu1 }
 0x2df   :  { %v930_v40 = vadd.f32 %v1064_v38, %v849_v37 }
 0x2e0   :  { %v924_v41 = vpop.f32.mrf.mxu1 }
 0x2e1   :  { %936 = vst.msk [vmem:[%s1360_s6 + $0x8] sm:$0x3] %vm935_vm15, %v930_v40  ;;  %v925_v42 = vadd.f32 %v924_v41, %v844_v39 }
 0x2e3   :  { %934 = vst.msk [vmem:[%s1360_s6] sm:$0xff] %vm933_vm0, %v925_v42 }

</bundles_post_ra>
